<compile_context>
chip_gen: v5e
topology: v5e:2x2
jax: 0.10.0
libtpu: 0.0.40
codegen_flags: <defaults>
</compile_context>

<pallas_src>
import jax
import jax.numpy as jnp
from jax import lax
from jax.experimental import pallas as pl
from jax.experimental.pallas import tpu as pltpu


def _model_kernel(x_ref, p_ref, o1_ref, o2_ref):
    # x_ref : (4, B) VMEM, row r = 2*k + i holds x[b, k, i]; B on the lane axis.
    # p_ref : (6,)   SMEM, [w00, w01, w10, w11, b0, b1] (torch Linear w[out, in]).
    # o1_ref: (2, B) VMEM, row j -> max_m( sum_i v3[b,i,j] * W[m,i] + b[m] )
    # o2_ref: (2, B) VMEM, row i -> max_m( sum_j v4[b,i,j] * W[m,j] + b[m] )
    w00 = p_ref[0]
    w01 = p_ref[1]
    w10 = p_ref[2]
    w11 = p_ref[3]
    b0 = p_ref[4]
    b1 = p_ref[5]

    xa = x_ref[0:1, :]                   # x[b, 0, 0]
    xb = x_ref[1:2, :]                   # x[b, 0, 1]
    xc = x_ref[2:3, :]                   # x[b, 1, 0]
    xd = x_ref[3:4, :]                   # x[b, 1, 1]

    # v2[b, i, j] = x[b,0,i]*W[j,0] + x[b,1,i]*W[j,1] + b[j]   (permute folded in)
    v2_00 = xa * w00 + xc * w01 + b0     # i=0, j=0
    v2_01 = xa * w10 + xc * w11 + b1     # i=0, j=1
    v2_10 = xb * w00 + xd * w01 + b0     # i=1, j=0
    v2_11 = xb * w10 + xd * w11 + b1     # i=1, j=1

    # tanhshrink(v) = v - tanh(v); one EUP burst on the sublane-stacked slab.
    v2 = jnp.concatenate([v2_00, v2_01, v2_10, v2_11], axis=0)   # (4, B)
    t = v2 - jnp.tanh(v2)
    t00 = t[0:1, :]
    t01 = t[1:2, :]
    t10 = t[2:3, :]
    t11 = t[3:4, :]

    # argmax over j (first occurrence -> index 0 on ties), added back as float.
    am0 = (t01 > t00).astype(jnp.float32)
    am1 = (t11 > t10).astype(jnp.float32)
    u00 = t00 + am0
    u01 = t01 + am0
    u10 = t10 + am1
    u11 = t11 + am1

    # v4 = (v3 == -1)
    q00 = (u00 == -1.0).astype(jnp.float32)
    q01 = (u01 == -1.0).astype(jnp.float32)
    q10 = (u10 == -1.0).astype(jnp.float32)
    q11 = (u11 == -1.0).astype(jnp.float32)

    # out1[b, j] = max_m( u_{0,j}*W[m,0] + u_{1,j}*W[m,1] + b[m] )
    o1_j0 = jnp.maximum(u00 * w00 + u10 * w01 + b0,
                        u00 * w10 + u10 * w11 + b1)
    o1_j1 = jnp.maximum(u01 * w00 + u11 * w01 + b0,
                        u01 * w10 + u11 * w11 + b1)
    o1_ref[...] = jnp.concatenate([o1_j0, o1_j1], axis=0)        # single full store

    # out2[b, i] = max_m( q_{i,0}*W[m,0] + q_{i,1}*W[m,1] + b[m] )
    o2_i0 = jnp.maximum(q00 * w00 + q01 * w01 + b0,
                        q00 * w10 + q01 * w11 + b1)
    o2_i1 = jnp.maximum(q10 * w00 + q11 * w01 + b0,
                        q10 * w10 + q11 * w11 + b1)
    o2_ref[...] = jnp.concatenate([o2_i0, o2_i1], axis=0)        # single full store


def model_forward(x, w, b):
    B, D, _ = x.shape
    assert D == 2, "module hard-codes Linear(2, 2)"
    # Lane-dense layout: 4 (k, i) entries on sublanes, batch on the lane axis.
    x_t = x.reshape(B, 2 * D).T.astype(jnp.float32)                    # (4, B)
    params = jnp.concatenate([w.reshape(-1), b]).astype(jnp.float32)   # (6,)

    out1_t, out2_t = pl.pallas_call(
        _model_kernel,
        out_shape=(jax.ShapeDtypeStruct((D, B), jnp.float32),
                   jax.ShapeDtypeStruct((D, B), jnp.float32)),
        in_specs=[
            pl.BlockSpec(memory_space=pltpu.MemorySpace.VMEM),   # x_t (4, B)
            pl.BlockSpec(memory_space=pltpu.MemorySpace.SMEM),   # packed w+b (6,)
        ],
        out_specs=(pl.BlockSpec(memory_space=pltpu.MemorySpace.VMEM),
                   pl.BlockSpec(memory_space=pltpu.MemorySpace.VMEM)),
    )(x_t, params)

    # Back to the PyTorch output layout: (B, 2) each.
    return out1_t.T, out2_t.T


def reference(x, w, b):
    """Pure-JAX mirror of the PyTorch forward (exact f32 contractions)."""
    hi = lax.Precision.HIGHEST
    v1 = jnp.transpose(x, (0, 2, 1))
    v2 = jnp.einsum("bik,jk->bij", v1, w, precision=hi) + b
    x2 = v2 - jnp.tanh(v2)
    idx = jnp.argmax(x2, axis=-1)[..., None].astype(x2.dtype)
    v3 = x2 + idx
    v4 = (v3 == -1.0).astype(x2.dtype)
    v3p = jnp.transpose(v3, (0, 2, 1))
    v3l = jnp.einsum("bji,mi->bjm", v3p, w, precision=hi) + b
    v4l = jnp.einsum("bij,mj->bim", v4, w, precision=hi) + b
    return jnp.max(v3l, axis=-1), jnp.max(v4l, axis=-1)


if __name__ == "__main__":
    key = jax.random.PRNGKey(0)
    kx, kw, kb = jax.random.split(key, 3)

    B, D = 2, 2  # module hard-codes Linear(2, 2); x1 is (B, 2, 2)
    x = jax.random.normal(kx, (B, D, D), dtype=jnp.float32)

    # Deterministic torch-Linear-style init: U(-1/sqrt(fan_in), 1/sqrt(fan_in))
    bound = 1.0 / (D ** 0.5)
    w = jax.random.uniform(kw, (D, D), minval=-bound, maxval=bound, dtype=jnp.float32)
    b = jax.random.uniform(kb, (D,), minval=-bound, maxval=bound, dtype=jnp.float32)

    out1, out2 = model_forward(x, w, b)
    jax.block_until_ready((out1, out2))

    ref1, ref2 = reference(x, w, b)
    # NOTE: the model's (v3 == -1) exact-equality and argmax ties are inherently
    # brittle to ULP-level tanh differences; the reference uses the same math.
    assert jnp.allclose(out1, ref1, atol=1e-5, rtol=1e-5), (out1, ref1)
    assert jnp.allclose(out2, ref2, atol=1e-5, rtol=1e-5), (out2, ref2)

    print("KERNEL_OK")
</pallas_src>

<mosaic_0001>
module attributes {stable_mosaic.version = 11 : i64} {
  func.func @_model_kernel(%arg0: memref<4x2xf32, #tpu.memory_space<vmem>>, %arg1: memref<6xf32, #tpu.memory_space<smem>>, %arg2: memref<2x2xf32, #tpu.memory_space<vmem>>, %arg3: memref<2x2xf32, #tpu.memory_space<vmem>>) attributes {dimension_semantics = [], scalar_prefetch = 0 : i64, scratch_operands = 0 : i64, tpu.core_type = #tpu.core_type<tc>} {
    %c0 = arith.constant 0 : index
    %0 = memref.load %arg1[%c0] : memref<6xf32, #tpu.memory_space<smem>>
    %c1 = arith.constant 1 : index
    %1 = memref.load %arg1[%c1] : memref<6xf32, #tpu.memory_space<smem>>
    %c2 = arith.constant 2 : index
    %2 = memref.load %arg1[%c2] : memref<6xf32, #tpu.memory_space<smem>>
    %c3 = arith.constant 3 : index
    %3 = memref.load %arg1[%c3] : memref<6xf32, #tpu.memory_space<smem>>
    %c4 = arith.constant 4 : index
    %4 = memref.load %arg1[%c4] : memref<6xf32, #tpu.memory_space<smem>>
    %c5 = arith.constant 5 : index
    %5 = memref.load %arg1[%c5] : memref<6xf32, #tpu.memory_space<smem>>
    %c0_0 = arith.constant 0 : index
    %c0_1 = arith.constant 0 : index
    %6 = vector.load %arg0[%c0_0, %c0_1] : memref<4x2xf32, #tpu.memory_space<vmem>>, vector<1x2xf32>
    %c1_2 = arith.constant 1 : index
    %c0_3 = arith.constant 0 : index
    %7 = vector.load %arg0[%c1_2, %c0_3] : memref<4x2xf32, #tpu.memory_space<vmem>>, vector<1x2xf32>
    %c2_4 = arith.constant 2 : index
    %c0_5 = arith.constant 0 : index
    %8 = vector.load %arg0[%c2_4, %c0_5] : memref<4x2xf32, #tpu.memory_space<vmem>>, vector<1x2xf32>
    %c3_6 = arith.constant 3 : index
    %c0_7 = arith.constant 0 : index
    %9 = vector.load %arg0[%c3_6, %c0_7] : memref<4x2xf32, #tpu.memory_space<vmem>>, vector<1x2xf32>
    %10 = vector.broadcast %0 : f32 to vector<1x2xf32>
    %11 = arith.mulf %6, %10 : vector<1x2xf32>
    %12 = vector.broadcast %1 : f32 to vector<1x2xf32>
    %13 = arith.mulf %8, %12 : vector<1x2xf32>
    %14 = arith.addf %11, %13 : vector<1x2xf32>
    %15 = vector.broadcast %4 : f32 to vector<1x2xf32>
    %16 = arith.addf %14, %15 : vector<1x2xf32>
    %17 = vector.broadcast %2 : f32 to vector<1x2xf32>
    %18 = arith.mulf %6, %17 : vector<1x2xf32>
    %19 = vector.broadcast %3 : f32 to vector<1x2xf32>
    %20 = arith.mulf %8, %19 : vector<1x2xf32>
    %21 = arith.addf %18, %20 : vector<1x2xf32>
    %22 = vector.broadcast %5 : f32 to vector<1x2xf32>
    %23 = arith.addf %21, %22 : vector<1x2xf32>
    %24 = vector.broadcast %0 : f32 to vector<1x2xf32>
    %25 = arith.mulf %7, %24 : vector<1x2xf32>
    %26 = vector.broadcast %1 : f32 to vector<1x2xf32>
    %27 = arith.mulf %9, %26 : vector<1x2xf32>
    %28 = arith.addf %25, %27 : vector<1x2xf32>
    %29 = vector.broadcast %4 : f32 to vector<1x2xf32>
    %30 = arith.addf %28, %29 : vector<1x2xf32>
    %31 = vector.broadcast %2 : f32 to vector<1x2xf32>
    %32 = arith.mulf %7, %31 : vector<1x2xf32>
    %33 = vector.broadcast %3 : f32 to vector<1x2xf32>
    %34 = arith.mulf %9, %33 : vector<1x2xf32>
    %35 = arith.addf %32, %34 : vector<1x2xf32>
    %36 = vector.broadcast %5 : f32 to vector<1x2xf32>
    %37 = arith.addf %35, %36 : vector<1x2xf32>
    %38 = tpu.concatenate %16, %23, %30, %37 in 0 : vector<1x2xf32>, vector<1x2xf32>, vector<1x2xf32>, vector<1x2xf32> -> vector<4x2xf32>
    %39 = math.tanh %38 : vector<4x2xf32>
    %40 = arith.subf %38, %39 : vector<4x2xf32>
    %41 = vector.extract_strided_slice %40 {offsets = [0, 0], sizes = [1, 2], strides = [1, 1]} : vector<4x2xf32> to vector<1x2xf32>
    %42 = vector.extract_strided_slice %40 {offsets = [1, 0], sizes = [1, 2], strides = [1, 1]} : vector<4x2xf32> to vector<1x2xf32>
    %43 = vector.extract_strided_slice %40 {offsets = [2, 0], sizes = [1, 2], strides = [1, 1]} : vector<4x2xf32> to vector<1x2xf32>
    %44 = vector.extract_strided_slice %40 {offsets = [3, 0], sizes = [1, 2], strides = [1, 1]} : vector<4x2xf32> to vector<1x2xf32>
    %45 = arith.cmpf ogt, %42, %41 : vector<1x2xf32>
    %46 = arith.extui %45 : vector<1x2xi1> to vector<1x2xi32>
    %47 = arith.sitofp %46 : vector<1x2xi32> to vector<1x2xf32>
    %48 = arith.cmpf ogt, %44, %43 : vector<1x2xf32>
    %49 = arith.extui %48 : vector<1x2xi1> to vector<1x2xi32>
    %50 = arith.sitofp %49 : vector<1x2xi32> to vector<1x2xf32>
    %51 = arith.addf %41, %47 : vector<1x2xf32>
    %52 = arith.addf %42, %47 : vector<1x2xf32>
    %53 = arith.addf %43, %50 : vector<1x2xf32>
    %54 = arith.addf %44, %50 : vector<1x2xf32>
    %cst = arith.constant -1.000000e+00 : f32
    %55 = vector.broadcast %cst : f32 to vector<1x2xf32>
    %56 = arith.cmpf oeq, %51, %55 : vector<1x2xf32>
    %57 = arith.extui %56 : vector<1x2xi1> to vector<1x2xi32>
    %58 = arith.sitofp %57 : vector<1x2xi32> to vector<1x2xf32>
    %cst_8 = arith.constant -1.000000e+00 : f32
    %59 = vector.broadcast %cst_8 : f32 to vector<1x2xf32>
    %60 = arith.cmpf oeq, %52, %59 : vector<1x2xf32>
    %61 = arith.extui %60 : vector<1x2xi1> to vector<1x2xi32>
    %62 = arith.sitofp %61 : vector<1x2xi32> to vector<1x2xf32>
    %cst_9 = arith.constant -1.000000e+00 : f32
    %63 = vector.broadcast %cst_9 : f32 to vector<1x2xf32>
    %64 = arith.cmpf oeq, %53, %63 : vector<1x2xf32>
    %65 = arith.extui %64 : vector<1x2xi1> to vector<1x2xi32>
    %66 = arith.sitofp %65 : vector<1x2xi32> to vector<1x2xf32>
    %cst_10 = arith.constant -1.000000e+00 : f32
    %67 = vector.broadcast %cst_10 : f32 to vector<1x2xf32>
    %68 = arith.cmpf oeq, %54, %67 : vector<1x2xf32>
    %69 = arith.extui %68 : vector<1x2xi1> to vector<1x2xi32>
    %70 = arith.sitofp %69 : vector<1x2xi32> to vector<1x2xf32>
    %71 = vector.broadcast %0 : f32 to vector<1x2xf32>
    %72 = arith.mulf %51, %71 : vector<1x2xf32>
    %73 = vector.broadcast %1 : f32 to vector<1x2xf32>
    %74 = arith.mulf %53, %73 : vector<1x2xf32>
    %75 = arith.addf %72, %74 : vector<1x2xf32>
    %76 = vector.broadcast %4 : f32 to vector<1x2xf32>
    %77 = arith.addf %75, %76 : vector<1x2xf32>
    %78 = vector.broadcast %2 : f32 to vector<1x2xf32>
    %79 = arith.mulf %51, %78 : vector<1x2xf32>
    %80 = vector.broadcast %3 : f32 to vector<1x2xf32>
    %81 = arith.mulf %53, %80 : vector<1x2xf32>
    %82 = arith.addf %79, %81 : vector<1x2xf32>
    %83 = vector.broadcast %5 : f32 to vector<1x2xf32>
    %84 = arith.addf %82, %83 : vector<1x2xf32>
    %85 = arith.maximumf %77, %84 : vector<1x2xf32>
    %86 = vector.broadcast %0 : f32 to vector<1x2xf32>
    %87 = arith.mulf %52, %86 : vector<1x2xf32>
    %88 = vector.broadcast %1 : f32 to vector<1x2xf32>
    %89 = arith.mulf %54, %88 : vector<1x2xf32>
    %90 = arith.addf %87, %89 : vector<1x2xf32>
    %91 = vector.broadcast %4 : f32 to vector<1x2xf32>
    %92 = arith.addf %90, %91 : vector<1x2xf32>
    %93 = vector.broadcast %2 : f32 to vector<1x2xf32>
    %94 = arith.mulf %52, %93 : vector<1x2xf32>
    %95 = vector.broadcast %3 : f32 to vector<1x2xf32>
    %96 = arith.mulf %54, %95 : vector<1x2xf32>
    %97 = arith.addf %94, %96 : vector<1x2xf32>
    %98 = vector.broadcast %5 : f32 to vector<1x2xf32>
    %99 = arith.addf %97, %98 : vector<1x2xf32>
    %100 = arith.maximumf %92, %99 : vector<1x2xf32>
    %101 = tpu.concatenate %85, %100 in 0 : vector<1x2xf32>, vector<1x2xf32> -> vector<2x2xf32>
    %c0_11 = arith.constant 0 : index
    %c0_12 = arith.constant 0 : index
    %102 = vector.load %arg2[%c0_11, %c0_12] : memref<2x2xf32, #tpu.memory_space<vmem>>, vector<2x2xf32>
    tpu.vector_store %arg2[%c0_11, %c0_12], %101 {strides = array<i32>} : memref<2x2xf32, #tpu.memory_space<vmem>>, vector<2x2xf32>,
    %103 = vector.broadcast %0 : f32 to vector<1x2xf32>
    %104 = arith.mulf %58, %103 : vector<1x2xf32>
    %105 = vector.broadcast %1 : f32 to vector<1x2xf32>
    %106 = arith.mulf %62, %105 : vector<1x2xf32>
    %107 = arith.addf %104, %106 : vector<1x2xf32>
    %108 = vector.broadcast %4 : f32 to vector<1x2xf32>
    %109 = arith.addf %107, %108 : vector<1x2xf32>
    %110 = vector.broadcast %2 : f32 to vector<1x2xf32>
    %111 = arith.mulf %58, %110 : vector<1x2xf32>
    %112 = vector.broadcast %3 : f32 to vector<1x2xf32>
    %113 = arith.mulf %62, %112 : vector<1x2xf32>
    %114 = arith.addf %111, %113 : vector<1x2xf32>
    %115 = vector.broadcast %5 : f32 to vector<1x2xf32>
    %116 = arith.addf %114, %115 : vector<1x2xf32>
    %117 = arith.maximumf %109, %116 : vector<1x2xf32>
    %118 = vector.broadcast %0 : f32 to vector<1x2xf32>
    %119 = arith.mulf %66, %118 : vector<1x2xf32>
    %120 = vector.broadcast %1 : f32 to vector<1x2xf32>
    %121 = arith.mulf %70, %120 : vector<1x2xf32>
    %122 = arith.addf %119, %121 : vector<1x2xf32>
    %123 = vector.broadcast %4 : f32 to vector<1x2xf32>
    %124 = arith.addf %122, %123 : vector<1x2xf32>
    %125 = vector.broadcast %2 : f32 to vector<1x2xf32>
    %126 = arith.mulf %66, %125 : vector<1x2xf32>
    %127 = vector.broadcast %3 : f32 to vector<1x2xf32>
    %128 = arith.mulf %70, %127 : vector<1x2xf32>
    %129 = arith.addf %126, %128 : vector<1x2xf32>
    %130 = vector.broadcast %5 : f32 to vector<1x2xf32>
    %131 = arith.addf %129, %130 : vector<1x2xf32>
    %132 = arith.maximumf %124, %131 : vector<1x2xf32>
    %133 = tpu.concatenate %117, %132 in 0 : vector<1x2xf32>, vector<1x2xf32> -> vector<2x2xf32>
    %c0_13 = arith.constant 0 : index
    %c0_14 = arith.constant 0 : index
    %134 = vector.load %arg3[%c0_13, %c0_14] : memref<2x2xf32, #tpu.memory_space<vmem>>, vector<2x2xf32>
    tpu.vector_store %arg3[%c0_13, %c0_14], %133 {strides = array<i32>} : memref<2x2xf32, #tpu.memory_space<vmem>>, vector<2x2xf32>,
    return
  }
}

</mosaic_0001>

<bundles_post_ra>
// kernel: tpu_custom_call.1
= control target key start
LH: loop header
LB: loop body
LE: loop exit
PB: predicated region body
PF: predicated region fallthrough
CT: control target
= control target key end

     0   :  { %9 = vsyncpa [#allocation4], 0  ;;  %s324_s0 = inlined_call_operand.vmem [shape: f32[4,2], index: 0, kind: input, shape index: {}]   ;;  %s325_s1 = inlined_call_operand.vmem [shape: f32[6], index: 1, kind: input, shape index: {}]   ;;  %s326_s2 = inlined_call_operand.hbm [shape: f32[2,2], index: 2, kind: output, shape index: {0}]   ;;  %s327_s3 = inlined_call_operand.hbm [shape: f32[2,2], index: 3, kind: output, shape index: {1}]  }
   0x1   :  { %10 = vsyncpa [#allocation3], 0 }
   0x2   :  { %11 = vsyncpa [#allocation7], 0  ;;  %s19_s14 = sshll.u32 %s325_s1, 4  ;;  %s260_s15 = smov [#allocation2]   ;;  %s20_s14 = int_to_ptr.vmem [resolvable:$true] %s19_s14 }
   0x3   :  { %22 = dma.vmem_to_smem %s20_s14, 16, %s260_s15, [#allocation4]  }
   0x4   :  { %254 = dma.done.wait [#allocation4], 16  }
   0x5   :  { %255 = vsyncadd [#allocation4], 4294967280 }
   0x6   :  { %27 = sfence }
   0x7   :  { %s28_s16 = sld [smem:[#allocation2]]  ;;  %v35_v0 = vld [vmem:[%s324_s0 + $0x1] sm:$0x1]  ;;  %v37_v1 = vld [vmem:[%s324_s0 + $0x3] sm:$0x1]  ;;  %vm69_vm0 = vcmask 1040384  }
   0x8   :  { %s180_s17 = sld [smem:[#allocation2 + $0x1]]  ;;  %v34_v2 = vld [vmem:[%s324_s0] sm:$0x1]  ;;  %v36_v4 = vld [vmem:[%s324_s0 + $0x2] sm:$0x1]  ;;  %vm71_vm1 = vcmask 1041408  }
   0x9   :  { %s181_s18 = sld [smem:[#allocation2 + $0x2]]  ;;  %vm73_vm2 = vcmask 1042432   ;;  %v261_v35 = vmov 0.0   ;;  %s262_s0 = smov [#allocation5]   ;;  %vm125_vm6 = vcmask 9216  }
   0xa   :  { %s182_s19 = sld [smem:[#allocation2 + $0x3]]  ;;  %s152_s29 = sshll.u32 %s262_s0, 4  ;;  %s153_s29 = int_to_ptr.vmem [resolvable:$true] %s152_s29 }
   0xb   :  { %s183_s20 = sld [smem:[#allocation2 + $0x4]]  ;;  %s154_s5 = sshll.u32 %s326_s2, 4  ;;  %s155_s5 = int_to_ptr.hbm [resolvable:$true] %s154_s5 }
   0xc   :  { %s184_s23 = sld [smem:[#allocation2 + $0x5]]  ;;  %s263_s6 = smov [#allocation6]  }
   0xd   :  { %v38_v3 = vstv %s28_s16  ;;  %s163_s7 = sshll.u32 %s263_s6, 4  ;;  %s165_s2 = sshll.u32 %s327_s3, 4  ;;  %s164_s7 = int_to_ptr.vmem [resolvable:$true] %s163_s7  ;;  %s166_s2 = int_to_ptr.hbm [resolvable:$true] %s165_s2 }
   0xe   :  { %v39_v5 = vmul.f32 %v38_v3, %v34_v2  ;;  %v40_v6 = vstv %s180_s17  ;;  %v52_v7 = vmul.f32 %v38_v3, %v35_v0 }
   0xf   :  { %v41_v8 = vmul.f32 %v40_v6, %v36_v4  ;;  %v45_v9 = vstv %s181_s18  ;;  %v53_v10 = vmul.f32 %v40_v6, %v37_v1 }
  0x10   :  { %v46_v11 = vmul.f32 %v45_v9, %v34_v2  ;;  %v47_v12 = vstv %s182_s19  ;;  %v56_v13 = vmul.f32 %v45_v9, %v35_v0 }
  0x11   :  { %v42_v14 = vadd.f32 %v41_v8, %v39_v5  ;;  %v299_v15 = vstv %s183_s20  ;;  %v48_v16 = vmul.f32 %v47_v12, %v36_v4  ;;  %v54_v17 = vadd.f32 %v53_v10, %v52_v7 }
  0x12   :  { %v301_v18 = vstv %s184_s23  ;;  %v57_v19 = vmul.f32 %v47_v12, %v37_v1 }
  0x13   :  { %v49_v20 = vadd.f32 %v48_v16, %v46_v11  ;;  %v55_v21 = vadd.f32 %v54_v17, %v299_v15  ;;  %v44_v23 = vadd.f32 %v299_v15, %v42_v14 }
  0x14   :  { %v58_v22 = vadd.f32 %v57_v19, %v56_v13 }
  0x15   :  { %v51_v24 = vadd.f32 %v301_v18, %v49_v20  ;;  %v64_v26 = vrot.slane %v55_v21, 6 }
  0x16   :  { %v59_v25 = vadd.f32 %v58_v22, %v301_v18 }
  0x17   :  { %v61_v27 = vrot.slane %v51_v24, 7 }
  0x18   :  { %v67_v28 = vrot.slane %v59_v25, 5 }
  0x19   :  { %v70_v29 = vsel %vm69_vm0, %v44_v23, %v61_v27 }
  0x1a   :  { %v72_v30 = vsel %vm71_vm1, %v70_v29, %v64_v26 }
  0x1b   :  { %v74_v31 = vsel %vm73_vm2, %v72_v30, %v67_v28 }
  0x1c   :  { %192 = vtanh.f32 %v74_v31 }
  0x22   :  { %v193_v32 = vpop.eup %192 }
  0x23   :  { %v76_v33 = vsub.f32 %v74_v31, %v193_v32 }
  0x25   :  { %v78_v34 = vrot.slane %v76_v33, 7 }
  0x27   :  { %vm80_vm3 = vcmp.gt.f32.partialorder %v76_v33, %v78_v34 }
  0x28   :  { %v185_v36 = vsel %vm80_vm3, 1.0, %v261_v35 }
  0x29   :  { %v84_v37 = vrot.slane %v185_v36, 1  ;;  %v87_v38 = vadd.f32 %v185_v36, %v76_v33 }
  0x2b   :  { %v86_v39 = vadd.f32 %v84_v37, %v76_v33  ;;  %v110_v40 = vmul.f32 %v87_v38, %v40_v6  ;;  %v109_v41 = vmul.f32 %v87_v38, %v38_v3  ;;  %v116_v42 = vmul.f32 %v87_v38, %v45_v9 }
  0x2c   :  { %v117_v43 = vmul.f32 %v87_v38, %v47_v12  ;;  %vm91_vm4 = vcmp.eq.f32.partialorder %v87_v38, -1.0 }
  0x2d   :  { %v94_v44 = vmul.f32 %v86_v39, %v38_v3  ;;  %v95_v45 = vmul.f32 %v86_v39, %v40_v6  ;;  %v101_v46 = vmul.f32 %v86_v39, %v45_v9  ;;  %v102_v47 = vmul.f32 %v86_v39, %v47_v12 }
  0x2e   :  { %v112_v48 = vrot.slane %v110_v40, 2  ;;  %v119_v49 = vrot.slane %v117_v43, 2  ;;  %vm88_vm5 = vcmp.eq.f32.partialorder %v86_v39, -1.0  ;;  %v187_v50 = vsel %vm91_vm4, 1.0, %v261_v35 }
  0x2f   :  { %v97_v51 = vrot.slane %v95_v45, 2  ;;  %v104_v52 = vrot.slane %v102_v47, 2  ;;  %v186_v53 = vsel %vm88_vm5, 1.0, %v261_v35  ;;  %v128_v54 = vmul.f32 %v187_v50, %v40_v6 }
  0x30   :  { %v114_v55 = vadd.f32 %v112_v48, %v109_v41  ;;  %v121_v56 = vadd.f32 %v119_v49, %v116_v42  ;;  %v127_v57 = vmul.f32 %v186_v53, %v38_v3  ;;  %v134_v58 = vmul.f32 %v186_v53, %v45_v9 }
  0x31   :  { %v99_v59 = vadd.f32 %v97_v51, %v94_v44  ;;  %v106_v60 = vadd.f32 %v104_v52, %v101_v46  ;;  %v130_v61 = vrot.slane %v128_v54, 1  ;;  %v135_v62 = vmul.f32 %v187_v50, %v47_v12 }
  0x32   :  { %v115_v63 = vadd.f32 %v114_v55, %v299_v15  ;;  %v122_v0 = vadd.f32 %v121_v56, %v301_v18 }
  0x33   :  { %v100_v1 = vadd.f32 %v99_v59, %v299_v15  ;;  %v107_v2 = vadd.f32 %v106_v60, %v301_v18  ;;  %v132_v4 = vadd.f32 %v130_v61, %v127_v57  ;;  %v137_v5 = vrot.slane %v135_v62, 1 }
  0x34   :  { %v123_v3 = vmax.f32 %v115_v63, %v122_v0 }
  0x35   :  { %v108_v6 = vmax.f32 %v100_v1, %v107_v2  ;;  %v133_v7 = vadd.f32 %v132_v4, %v299_v15  ;;  %v139_v8 = vadd.f32 %v137_v5, %v134_v58 }
  0x37   :  { %v124_v9 = vsel %vm69_vm0, %v108_v6, %v123_v3  ;;  %v140_v10 = vadd.f32 %v139_v8, %v301_v18 }
  0x38   :  { %126 = vst.msk [vmem:[#allocation5] sm:$0x3] %vm125_vm6, %v124_v9 }
  0x39   :  { %v141_v11 = vmax.f32 %v133_v7, %v140_v10  ;;  %157 = dma.vmem_to_hbm [thread:$0]  %s153_s29, 32, %s155_s5, [#allocation3]  }
  0x3b   :  { %v143_v12 = vrot.slane %v141_v11, 1 }
  0x3d   :  { %v145_v13 = vsel %vm69_vm0, %v141_v11, %v143_v12 }
  0x3e   :  { %146 = vst.msk [vmem:[#allocation6] sm:$0x3] %vm125_vm6, %v145_v13 }
  0x3f   :  { %168 = dma.vmem_to_hbm [thread:$0]  %s164_s7, 32, %s166_s2, [#allocation7]  }
  0x40   :  { %256 = dma.done.wait [#allocation3], 32  }
  0x41   :  { %257 = vsyncadd [#allocation3], 4294967264 }
  0x42   :  { %258 = dma.done.wait [#allocation7], 32  }
  0x43   :  { %259 = vsyncadd [#allocation7], 4294967264 }
  0x44   :  { %177 = vsyncpa [#allocation3], 1 }
  0x45   :  { %178 = vsyncpa [#allocation7], 1 }
  0x46   :  { %179 = vsyncpa [#allocation4], 1 }

</bundles_post_ra>
